<compile_context>
chip_gen: v7x
topology: tpu7x:2x2x1
jax: 0.10.0
libtpu: 0.0.40
codegen_flags: <defaults>
</compile_context>

<pallas_src>
import functools

import jax
import jax.numpy as jnp
from jax import lax
from jax.experimental import pallas as pl
from jax.experimental.pallas import tpu as pltpu


def _ceil_to(x, m):
    return ((x + m - 1) // m) * m


# ----------------------------- kernel 1: projection -----------------------------
def _proj_kernel(h_ref, wlin_ref, wpack_ref, g_ref, el_ref, er_ref, *, n_heads):
    # g = h @ W_lin : bf16 x bf16 MXU operands, f32 accumulation.
    g = jnp.dot(h_ref[...], wlin_ref[...], preferred_element_type=jnp.float32)
    # all heads' attention projections via ONE packed block-diagonal matmul
    # (taken from the f32 accumulator so el/er keep f32 accuracy):
    #   ee[:, hd]     = <g[:, hd*Fh:(hd+1)*Fh], w_l>   (target-node term)
    #   ee[:, H + hd] = <g[:, hd*Fh:(hd+1)*Fh], w_r>   (source-node term)
    ee = jnp.dot(g, wpack_ref[...], preferred_element_type=jnp.float32)
    g_ref[...] = g.astype(g_ref.dtype)          # bf16 operand for the aggregation matmul
    el_ref[...] = ee[:, :n_heads]
    er_ref[...] = ee[:, n_heads:]


# ----------------------------- kernel 2: attention ------------------------------
def _gat_attn_kernel(el_ref, er_ref, g_ref, adj_ref, sp_ref, out_ref,
                     *, n_heads, n_hidden, n_real, hf_pad, slope):
    neg_inf = jnp.float32(-jnp.inf)                        # hoisted constant
    tile_i, n_pad = adj_ref.shape[1], adj_ref.shape[2]

    el_all = el_ref[...]           # [TILE_I, H]      f32  (this row tile)
    er_all = er_ref[...]           # [H, N_pad]       f32  (resident)
    g_all = g_ref[...]             # [N_pad, H*F_h]   bf16 (resident)

    # padded neighbor columns must not leak into the (otherwise unmasked) final softmax
    if n_pad > n_real:
        col = lax.broadcasted_iota(jnp.int32, (tile_i, n_pad), 1)
        pad_cols = col >= n_real
    else:
        pad_cols = None

    outs = []
    for hd in range(n_heads):                              # H is small: static unroll
        lo = hd * n_hidden
        # single chained [TILE_I, N_pad] temporary:
        #   e -> leaky -> mask -> softmax(a) -> (+ s') -> softmax(final)
        x = el_all[:, hd:hd + 1] + er_all[hd:hd + 1, :]    # e[i, j]
        x = jnp.where(x >= 0, x, slope * x)                # LeakyReLU
        x = jnp.where(adj_ref[hd] == 0, neg_inf, x)        # mask non-edges (int8 adj)
        # softmax over neighbors j (e unbounded -> keep the max pass); EUP reciprocal
        x = jnp.exp(x - jnp.max(x, axis=-1, keepdims=True))
        x = x * pl.reciprocal(jnp.sum(x, axis=-1, keepdims=True), approx=True)
        # add the precomputed structural softmax s' (streamed as bf16) -> values in [0,2]
        x = x + sp_ref[hd].astype(jnp.float32)
        if pad_cols is not None:                           # only padding is masked
            x = jnp.where(pad_cols, neg_inf, x)            # (torch does NOT re-mask)
        # final softmax: input bounded in [0,2] (or -inf) -> no max pass needed
        x = jnp.exp(x)
        x = x * pl.reciprocal(jnp.sum(x, axis=-1, keepdims=True), approx=True)
        # dropout == identity (eval mode)
        outs.append(jnp.dot(x.astype(g_all.dtype),         # bf16 x bf16 -> f32 acc
                            g_all[:, lo:lo + n_hidden],
                            preferred_element_type=jnp.float32))

    res = jnp.concatenate(outs, axis=-1)
    hf = n_heads * n_hidden
    if hf_pad > hf:                    # keep the single store lane-dense (>=128 lanes)
        res = jnp.concatenate(
            [res, jnp.zeros((tile_i, hf_pad - hf), jnp.float32)], axis=-1)
    out_ref[...] = res


# ---------------------------------- wrapper --------------------------------------
def graph_attention_layer(h, w_lin, w_attn, adj, s, *, n_heads, n_hidden,
                          leaky_relu_negative_slope=0.2):
    """Pallas implementation of GraphAttentionLayer.forward (is_concat=True, eval)."""
    n_real, f_in = h.shape
    hf = n_heads * n_hidden
    hf_pad = 128 if hf < 128 else hf          # lane-dense output store

    # ---- generation-aware VMEM budget (v7x: 64 MiB, v5e/v6e: 128 MiB) ----
    try:
        vmem_cap = int(pltpu.get_tpu_info().vmem_capacity_bytes)
    except Exception:
        vmem_cap = 64 * 1024 * 1024           # conservative fallback (v7x-sized)
    vmem_limit = min((vmem_cap * 3) // 4, 100 * 1024 * 1024)
    budget = vmem_limit - 6 * 1024 * 1024     # headroom for Mosaic internal scratch

    n8 = _ceil_to(max(n_real, 1), 8)

    def _vmem_use(t, npad):
        # streamed, double-buffered blocks: adj (int8) + s' (bf16) + el + out
        streamed = 2 * (n_heads * t * npad * (1 + 2) + t * n_heads * 4 + t * hf_pad * 4)
        # resident operands (constant index maps), conservatively counted x2 buffers
        resident = 2 * (n_heads * npad * 4 + npad * hf * 2)
        # ~8 live [t, npad] f32 temporaries per head iteration + per-head partial outs
        temps = 8 * t * npad * 4 + n_heads * t * n_hidden * 4
        return streamed + resident + temps

    candidates = [t for t in (512, 256, 128, 64, 32, 16, 8) if t <= n8]
    if n8 >= 16:   # keep >= 2 row tiles so v7x's second TensorCore has work
        two = [t for t in candidates if (_ceil_to(n_real, t) // t) >= 2]
        candidates = two if two else candidates
    tile_i = candidates[-1]
    for t in candidates:                       # largest tile that fits the VMEM budget
        if _vmem_use(t, _ceil_to(n_real, t)) <= budget:
            tile_i = t
            break
    # TODO(synk): if even the smallest row tile exceeds VMEM (huge N), the neighbor
    #             axis would also need tiling (online softmax-of-softmax).
    n_pad = _ceil_to(n_real, tile_i)
    n_tiles = n_pad // tile_i

    # ---- pad & repack inputs (layout plumbing stays in XLA, outside the kernels) ----
    h_bf = jnp.zeros((n_pad, f_in), jnp.bfloat16).at[:n_real, :].set(
        h.astype(jnp.bfloat16))
    w_lin_bf = jnp.asarray(w_lin, jnp.float32).astype(jnp.bfloat16)

    adj_bool = (adj != 0)                                            # [H, N, N]
    adj_i8 = jnp.zeros((n_heads, n_pad, n_pad), jnp.int8)
    adj_i8 = adj_i8.at[:, :n_real, :n_real].set(adj_bool.astype(jnp.int8))
    if n_pad > n_real:
        # self-loops on padded rows keep their (discarded) softmax rows finite
        pad_idx = jnp.arange(n_real, n_pad)
        adj_i8 = adj_i8.at[:, pad_idx, pad_idx].set(jnp.int8(1))

    # s' = softmax(masked s) precomputed exactly in XLA, streamed to the kernel as bf16
    neg_inf = jnp.float32(-jnp.inf)
    s_masked = jnp.where(adj_bool, s.astype(jnp.float32), neg_inf)
    s_prime = jax.nn.softmax(s_masked, axis=-1)                      # [H, N, N]
    sp_bf = jnp.zeros((n_heads, n_pad, n_pad), jnp.bfloat16)
    sp_bf = sp_bf.at[:, :n_real, :n_real].set(s_prime.astype(jnp.bfloat16))

    # packed block-diagonal attention weights: one matmul yields all heads' el | er
    w_attn = jnp.asarray(w_attn, jnp.float32).reshape(2 * n_hidden)
    eye = jnp.eye(n_heads, dtype=jnp.float32)
    w_pack = jnp.concatenate(
        [jnp.kron(eye, w_attn[:n_hidden].reshape(n_hidden, 1)),
         jnp.kron(eye, w_attn[n_hidden:].reshape(n_hidden, 1))], axis=1)  # [HF, 2H]

    # ---- kernel 1: projection + batched attention projections ----
    g_bf16, el, er_nh = pl.pallas_call(
        functools.partial(_proj_kernel, n_heads=n_heads),
        grid=(n_tiles,),
        in_specs=[pl.BlockSpec((tile_i, f_in), lambda it: (it, 0)),
                  pl.BlockSpec((f_in, hf), lambda it: (0, 0)),
                  pl.BlockSpec((hf, 2 * n_heads), lambda it: (0, 0))],
        out_specs=(pl.BlockSpec((tile_i, hf), lambda it: (it, 0)),
                   pl.BlockSpec((tile_i, n_heads), lambda it: (it, 0)),
                   pl.BlockSpec((tile_i, n_heads), lambda it: (it, 0))),
        out_shape=(jax.ShapeDtypeStruct((n_pad, hf), jnp.bfloat16),
                   jax.ShapeDtypeStruct((n_pad, n_heads), jnp.float32),
                   jax.ShapeDtypeStruct((n_pad, n_heads), jnp.float32)),
        compiler_params=pltpu.CompilerParams(dimension_semantics=("parallel",)),
    )(h_bf, w_lin_bf, w_pack)

    # one-time [N,H] -> [H,N] relayout so the hot loop never transposes (er used as a row)
    er_hn = er_nh.T

    # ---- kernel 2: masked double-softmax attention + aggregation ----
    # TODO(synk): mark er/g single-buffered (pipeline_mode=pl.Buffered(1)) once that
    #             path is validated on the deployed jax version; saves extra VMEM.
    out_p = pl.pallas_call(
        functools.partial(_gat_attn_kernel, n_heads=n_heads, n_hidden=n_hidden,
                          n_real=n_real, hf_pad=hf_pad,
                          slope=float(leaky_relu_negative_slope)),
        grid=(n_tiles,),
        in_specs=[pl.BlockSpec((tile_i, n_heads), lambda it: (it, 0)),            # el
                  pl.BlockSpec((n_heads, n_pad), lambda it: (0, 0)),              # er (resident)
                  pl.BlockSpec((n_pad, hf), lambda it: (0, 0)),                   # g  (resident, bf16)
                  pl.BlockSpec((n_heads, tile_i, n_pad), lambda it: (0, it, 0)),  # adj (int8)
                  pl.BlockSpec((n_heads, tile_i, n_pad), lambda it: (0, it, 0))], # s'  (bf16)
        out_specs=pl.BlockSpec((tile_i, hf_pad), lambda it: (it, 0)),
        out_shape=jax.ShapeDtypeStruct((n_pad, hf_pad), jnp.float32),
        compiler_params=pltpu.CompilerParams(
            dimension_semantics=("parallel",),      # row tiles shard across v7x's 2 TCs
            vmem_limit_bytes=int(vmem_limit)),
    )(el, er_hn, g_bf16, adj_i8, sp_bf)

    return out_p[:n_real, :hf]


# ------------------------------- pure-JAX reference -------------------------------
def graph_attention_layer_ref(h, w_lin, w_attn, adj, s, *, n_heads, n_hidden, slope=0.2):
    """Pure-JAX reference (mirrors the torch forward, eval mode)."""
    n = h.shape[0]
    g = (h @ w_lin).reshape(n, n_heads, n_hidden)                       # [N, H, F_h]
    wl = w_attn[:n_hidden]
    wr = w_attn[n_hidden:]
    el = jnp.einsum('ihf,f->ih', g, wl)                                 # [N, H]
    er = jnp.einsum('jhf,f->jh', g, wr)                                 # [N, H]
    e = el[:, None, :] + er[None, :, :]                                 # [N, N, H]
    e = jnp.where(e >= 0, e, slope * e)
    adj_nnh = jnp.transpose(adj, (1, 2, 0))                             # [N, N, H]
    s_nnh = jnp.transpose(s, (1, 2, 0))
    neg_inf = jnp.float32(-jnp.inf)
    e = jnp.where(adj_nnh == 0, neg_inf, e)
    s_m = jnp.where(adj_nnh == 0, neg_inf, s_nnh)
    a = jax.nn.softmax(e, axis=1)
    s_prime = jax.nn.softmax(s_m, axis=1)
    new_att = jax.nn.softmax(a + s_prime, axis=1)
    attn_res = jnp.einsum('ijh,jhf->ihf', new_att, g)
    return attn_res.reshape(n, n_heads * n_hidden)


if __name__ == "__main__":
    def run_case(key, n, f_in, out_features, n_heads):
        fh = out_features // n_heads
        k_h, k_w, k_a, k_adj, k_s = jax.random.split(key, 5)
        h = jax.random.normal(k_h, (n, f_in), dtype=jnp.float32) * 0.5
        w_lin = jax.random.normal(k_w, (f_in, n_heads * fh), dtype=jnp.float32) * 0.2
        w_attn = jax.random.normal(k_a, (2 * fh,), dtype=jnp.float32) * 0.2
        # adjacency: random edges + self-loops (avoid fully-masked rows), same per head
        adj2d = (jax.random.uniform(k_adj, (n, n)) > 0.5).astype(jnp.float32)
        adj2d = jnp.maximum(adj2d, jnp.eye(n, dtype=jnp.float32))
        adj = jnp.broadcast_to(adj2d[None], (n_heads, n, n))            # [H, N, N]
        s = jax.random.normal(k_s, (n_heads, n, n), dtype=jnp.float32)  # [H, N, N]

        out = graph_attention_layer(h, w_lin, w_attn, adj, s,
                                    n_heads=n_heads, n_hidden=fh)
        out = jax.block_until_ready(out)
        ref = graph_attention_layer_ref(h, w_lin, w_attn, adj, s,
                                        n_heads=n_heads, n_hidden=fh, slope=0.2)
        ref = jax.block_until_ready(ref)

        assert out.shape == (n, n_heads * fh)
        assert bool(jnp.all(jnp.isfinite(out)))
        err = float(jnp.max(jnp.abs(out - ref)))
        assert bool(jnp.allclose(out, ref, rtol=2e-2, atol=2e-2)), \
            f"max abs diff = {err}"

    root = jax.random.PRNGKey(0)
    k1, k2, k3 = jax.random.split(root, 3)
    # case 1: N=8 nodes, in=16, out=32, heads=4 (n_hidden=8); single tile, no padding
    run_case(k1, n=8, f_in=16, out_features=32, n_heads=4)
    # case 2: N=12 (not 8-aligned) exercises the row/column padding path + 2 tiles
    run_case(k2, n=12, f_in=8, out_features=16, n_heads=2)
    # case 3: N=40, 3 heads; larger padding (40 -> 64) with a mixed real/pad tile
    run_case(k3, n=40, f_in=12, out_features=48, n_heads=3)

    print("KERNEL_OK")
</pallas_src>

<mosaic_0001>
module attributes {stable_mosaic.version = 11 : i64} {
  func.func @_proj_kernel(%arg0: i32, %arg1: memref<8x16xbf16, #tpu.memory_space<vmem>>, %arg2: memref<16x32xbf16, #tpu.memory_space<vmem>>, %arg3: memref<32x8xf32, #tpu.memory_space<vmem>>, %arg4: memref<8x32xbf16, #tpu.memory_space<vmem>>, %arg5: memref<8x4xf32, #tpu.memory_space<vmem>>, %arg6: memref<8x4xf32, #tpu.memory_space<vmem>>) attributes {dimension_semantics = [#tpu.dimension_semantics<parallel>], iteration_bounds = array<i64: 1>, scalar_prefetch = 0 : i64, scratch_operands = 0 : i64, tpu.core_type = #tpu.core_type<tc>, window_params = [{transform_indices = @transform_0, window_bounds = array<i64: 8, 16>}, {pipeline_mode = #tpu.pipeline_mode<synchronous>, transform_indices = @transform_1, window_bounds = array<i64: 16, 32>}, {pipeline_mode = #tpu.pipeline_mode<synchronous>, transform_indices = @transform_2, window_bounds = array<i64: 32, 8>}, {transform_indices = @transform_3, window_bounds = array<i64: 8, 32>}, {transform_indices = @transform_4, window_bounds = array<i64: 8, 4>}, {transform_indices = @transform_5, window_bounds = array<i64: 8, 4>}]} {
    %c0 = arith.constant 0 : index
    %c0_0 = arith.constant 0 : index
    %0 = vector.load %arg1[%c0, %c0_0] : memref<8x16xbf16, #tpu.memory_space<vmem>>, vector<8x16xbf16>
    %c0_1 = arith.constant 0 : index
    %c0_2 = arith.constant 0 : index
    %1 = vector.load %arg2[%c0_1, %c0_2] : memref<16x32xbf16, #tpu.memory_space<vmem>>, vector<16x32xbf16>
    %cst = arith.constant dense<0.000000e+00> : vector<8x32xf32>
    %2 = tpu.matmul %0, %1, %cst {dimension_numbers = #tpu.dot_dimension_numbers<[1], [0], [0], [1], [0, 0, 1, 1], [], []>} : vector<8x16xbf16>, vector<16x32xbf16>, vector<8x32xf32> -> vector<8x32xf32>
    %c0_3 = arith.constant 0 : index
    %c0_4 = arith.constant 0 : index
    %3 = vector.load %arg3[%c0_3, %c0_4] : memref<32x8xf32, #tpu.memory_space<vmem>>, vector<32x8xf32>
    %cst_5 = arith.constant dense<0.000000e+00> : vector<8x8xf32>
    %4 = tpu.matmul %2, %3, %cst_5 {dimension_numbers = #tpu.dot_dimension_numbers<[1], [0], [0], [1], [0, 0, 1, 1], [], []>} : vector<8x32xf32>, vector<32x8xf32>, vector<8x8xf32> -> vector<8x8xf32>
    %5 = arith.truncf %2 : vector<8x32xf32> to vector<8x32xbf16>
    %c0_6 = arith.constant 0 : index
    %c0_7 = arith.constant 0 : index
    %6 = vector.load %arg4[%c0_6, %c0_7] : memref<8x32xbf16, #tpu.memory_space<vmem>>, vector<8x32xbf16>
    tpu.vector_store %arg4[%c0_6, %c0_7], %5 {strides = array<i32>} : memref<8x32xbf16, #tpu.memory_space<vmem>>, vector<8x32xbf16>,
    %7 = vector.extract_strided_slice %4 {offsets = [0, 0], sizes = [8, 4], strides = [1, 1]} : vector<8x8xf32> to vector<8x4xf32>
    %c0_8 = arith.constant 0 : index
    %c0_9 = arith.constant 0 : index
    %8 = vector.load %arg5[%c0_8, %c0_9] : memref<8x4xf32, #tpu.memory_space<vmem>>, vector<8x4xf32>
    tpu.vector_store %arg5[%c0_8, %c0_9], %7 {strides = array<i32>} : memref<8x4xf32, #tpu.memory_space<vmem>>, vector<8x4xf32>,
    %9 = vector.extract_strided_slice %4 {offsets = [0, 4], sizes = [8, 4], strides = [1, 1]} : vector<8x8xf32> to vector<8x4xf32>
    %c0_10 = arith.constant 0 : index
    %c0_11 = arith.constant 0 : index
    %10 = vector.load %arg6[%c0_10, %c0_11] : memref<8x4xf32, #tpu.memory_space<vmem>>, vector<8x4xf32>
    tpu.vector_store %arg6[%c0_10, %c0_11], %9 {strides = array<i32>} : memref<8x4xf32, #tpu.memory_space<vmem>>, vector<8x4xf32>,
    return
  }
  func.func @transform_0(%arg0: i32) -> (i32, i32) {
    %c0_i32 = arith.constant 0 : i32
    %c0_i32_0 = arith.constant 0 : i32
    return %arg0, %c0_i32 : i32, i32
  }
  func.func @transform_1(%arg0: i32) -> (i32, i32) {
    %c0_i32 = arith.constant 0 : i32
    %c0_i32_0 = arith.constant 0 : i32
    %c0_i32_1 = arith.constant 0 : i32
    return %c0_i32, %c0_i32_0 : i32, i32
  }
  func.func @transform_2(%arg0: i32) -> (i32, i32) {
    %c0_i32 = arith.constant 0 : i32
    %c0_i32_0 = arith.constant 0 : i32
    %c0_i32_1 = arith.constant 0 : i32
    return %c0_i32, %c0_i32_0 : i32, i32
  }
  func.func @transform_3(%arg0: i32) -> (i32, i32) {
    %c0_i32 = arith.constant 0 : i32
    %c0_i32_0 = arith.constant 0 : i32
    return %arg0, %c0_i32 : i32, i32
  }
  func.func @transform_4(%arg0: i32) -> (i32, i32) {
    %c0_i32 = arith.constant 0 : i32
    %c0_i32_0 = arith.constant 0 : i32
    return %arg0, %c0_i32 : i32, i32
  }
  func.func @transform_5(%arg0: i32) -> (i32, i32) {
    %c0_i32 = arith.constant 0 : i32
    %c0_i32_0 = arith.constant 0 : i32
    return %arg0, %c0_i32 : i32, i32
  }
}

</mosaic_0001>

<bundles_post_ra>
// kernel: tpu_custom_call.1
= control target key start
LH: loop header
LB: loop body
LE: loop exit
PB: predicated region body
PF: predicated region fallthrough
CT: control target
= control target key end

     0   :  { %v245_v1 = vmov 0.0   ;;  %vm246_vm0 = vmmov 0   ;;  %vm28_vm1 = vcmask 130048   ;;  %v247_v7 = vmov 0.0|0.0   ;;  %s316_s0 = inlined_call_operand.vmem [shape: bf16[8,16], index: 0, kind: input, shape index: {}]   ;;  %s317_s1 = inlined_call_operand.vmem [shape: bf16[16,32], index: 1, kind: input, shape index: {}]   ;;  %s318_s2 = inlined_call_operand.vmem [shape: f32[32,8], index: 2, kind: input, shape index: {}]   ;;  %s319_s3 = inlined_call_operand.hbm [shape: bf16[8,32], index: 3, kind: output, shape index: {0}]   ;;  %s320_s4 = inlined_call_operand.vmem [shape: f32[8,4], index: 4, kind: output, shape index: {1}]   ;;  %s321_s5 = inlined_call_operand.vmem [shape: f32[8,4], index: 5, kind: output, shape index: {2}]  }
   0x1   :  { %v220_v0 = vld [vmem:[%s317_s1] sm:$0xff]   ;;  %192 = vmatprep.subr.bf16.mxu0 %v245_v1  ;;  %194 = vmatprep.mubr.msk.bf16.mxu0 %vm246_vm0, %v245_v1  ;;  %v73_v4 = vld [vmem:[%s318_s2 + $0x8] sm:$0xff]  ;;  %v74_v5 = vld [vmem:[%s318_s2 + $0x10] sm:$0xff] }
   0x2   :  { %v19_v2 = vld [vmem:[%s316_s0] sm:$0xf]  ;;  %193 = vmatpush3.bf16.msra.mxu0 %v220_v0  ;;  %v75_v6 = vld [vmem:[%s318_s2 + $0x18] sm:$0xff]  ;;  %209 = vmatprep.subr.bf16.mxu1 %v247_v7 }
   0x3   :  { %v72_v3 = vld [vmem:[%s318_s2] sm:$0xff]  ;;  %206 = vmatprep.mubr.msk.f32.mxu1 %vm246_vm0, %v245_v1 }
   0x4   :  { %v210_v8 = vpack.c.bf16 %v73_v4, %v72_v3 }
   0x5   :  { %11 = vsyncpa [#allocation3], 0  ;;  %195 = vmatmul.mubr.msk.bf16.vlgmr.msra.gmra.mrb[0].mxu0 %vm28_vm1, %v19_v2  ;;  %v213_v9 = vpack.c.bf16 %v75_v6, %v74_v5  ;;  %vm76_vm2 = vcmask 261120   ;;  %vm151_vm3 = vcmask 257024   ;;  %s248_s0 = smov [#allocation2]  }
   0x6   :  { %211 = vmatpush3.bf16.msra.mxu1 %v210_v8  ;;  %s166_s2 = sshll.u32 %s248_s0, 4  ;;  %s167_s2 = int_to_ptr.vmem [resolvable:$true] %s166_s2 }
   0x7   :  { %212 = vmatprep.subr.bf16.mxu1 %v247_v7  ;;  %s221_s29 = scalar_lea.vmem %s167_s2, 64  ;;  %p226_p1 = scmp.lt.s32.totalorder %s167_s2, %s167_s2 }
   0x8   :  { %p222_p0 = scmp.ne.s32.totalorder %s167_s2, %s221_s29  ;;  %p227_p2 = scmp.lt.s32.totalorder %s221_s29, %s221_s29 }
   0xa   :  { %214 = vmatpush3.bf16.msra.mxu1 %v213_v9  ;;  %p228_p3 = por %p227_p2, %p226_p1 }
   0xc   :  { %p229_p4 = pnand %p228_p3, %p222_p0 }
  0xd8   :  { %v66_v10 = vpop.f32.mrb[0].mxu0 }
  0xd9   :  { %v150_v11 = vpack.c.bf16 %v66_v10, %v66_v10  ;;  %v196_v12 = vpop.f32.mrb[1].mxu0  ;;  %207 = vmatmul.mubr.msk.f32.vlgmr.msra.gmra.mrb[0].mxu1 %vm76_vm2, %v66_v10 }
  0xda   :  { %v69_v13 = vpop.f32.mrb[2].mxu0 }
  0xdb   :  { %v197_v14 = vpop.f32.mrb[3].mxu0  ;;  %152 = vst.msk [vmem:[#allocation2] sm:$0xf] %vm151_vm3, %v150_v11 }
  0xdc   :  { %232 = shalt.err (!%p229_p4)
}
  0xdd   :  { %s233_s7 = scalar_lea.hbm %s319_s3, 64 }
  0xde   :  { %p234_p5 = scmp.ne.s32.totalorder %s319_s3, %s233_s7  ;;  %p237_p6 = scmp.lt.u32.totalorder %s233_s7, %s319_s3 }
  0xe0   :  { %p239_p7 = pnand %p237_p6, %p234_p5 }
  0xe2   :  { %242 = shalt.err (!%p239_p7)
}
  0xe3   :  { %169 = dma.vmem_to_hbm [thread:$0]  %s167_s2, 64, %s319_s3, [#allocation3]   ;;  %vm153_vm4 = vcmask 31744  }
  0xe4   :  { %s249_s14 = smov 124  }
 0x1ac   :  { %v146_v15 = vpop.f32.mrb[0].mxu1 }
 0x1ad   :  { %v208_v16 = vpop.f32.mrb[1].mxu1  ;;  %156 = vrot.lane.b32.xlu0 %v146_v15, %s249_s14  ;;  %154 = vst.msk [vmem:[%s320_s4] sm:$0xff] %vm153_vm4, %v146_v15 }
 0x21f   :  { %v157_v17 = vpop.permute.xlu0 %156 }
 0x220   :  { %159 = vst.msk [vmem:[%s321_s5] sm:$0xff] %vm153_vm4, %v157_v17 }
 0x221   :  { %243 = dma.done.wait [#allocation3], 64  }
 0x222   :  { %244 = vsyncadd [#allocation3], 4294967232 }
 0x223   :  { %181 = vsyncpa [#allocation3], 1 }

</bundles_post_ra>
